<compile_context>
chip_gen: v7x
topology: tpu7x:2x2x1
jax: 0.10.0
libtpu: 0.0.40
codegen_flags: <defaults>
</compile_context>

<pallas_src>
import math

import jax
import jax.numpy as jnp
from jax.experimental import pallas as pl
from jax.experimental.pallas import tpu as pltpu

BN_EPS = 1e-5
LEAKY_SLOPE = 0.1


def _make_gc_block_kernel(batch, node_n, feat):
    B, N, F = batch, node_n, feat
    assert B >= 2 and (B & (B - 1)) == 0, "kernel is specialized to power-of-two batch"
    Bh = B // 2
    H = Bh * F  # lane width of each activation half (128 for B=8, F=32)

    def kernel(x_ref, w_ref, att_ref, aff_ref, o_ref):
        # x_ref:   (N, B*F)      activations, node-major, lane-dense
        # w_ref:   (2, H, H)     kron(I_{B/2}, W_l): the (shared) diagonal 128-block of kron(I_B, W_l)
        # att_ref: (2, N, N)     graph weights
        # aff_ref: (2, 2, N, H)  [l,0]=gamma, [l,1]=beta, tiled B/2 times over lanes
        # o_ref:   (N, B*F)
        x_lo = x_ref[:, :H]          # batches 0 .. B/2-1   (vreg-aligned lane slice)
        x_hi = x_ref[:, H:]          # batches B/2 .. B-1

        def batch_sum(a, b):
            # Exact-f32 per-(node,feature) batch sum, replicated in-layout.
            # The B entries of a given (n, f) sit at lanes {f, F+f, ...} split across
            # the two halves: add the halves (replaces the 128-lane roll), then a
            # log2(B/2)-step butterfly of cyclic lane rolls (XLU slot, near-free).
            s = a + b
            k = F
            while k < H:
                s = s + pltpu.roll(s, shift=k, axis=1)
                k *= 2
            return s

        def layer(h_lo, h_hi, l):
            w = w_ref[l, :, :]
            att = att_ref[l, :, :]
            # GraphConvolution: (h @ W) then (att @ .), per half -> four lane-dense
            # 2-D MXU matmuls, no in-kernel reshape/relayout.  The bias is omitted:
            # it is cancelled exactly by the training-mode BN mean subtraction below.
            s_lo = jnp.dot(h_lo, w, preferred_element_type=jnp.float32)
            s_hi = jnp.dot(h_hi, w, preferred_element_type=jnp.float32)
            y_lo = jnp.dot(att, s_lo, preferred_element_type=jnp.float32)
            y_hi = jnp.dot(att, s_hi, preferred_element_type=jnp.float32)

            # BatchNorm1d(node_n*F), training mode: per-(n,f) batch stats, biased var.
            mean = batch_sum(y_lo, y_hi) * (1.0 / B)
            c_lo = y_lo - mean
            c_hi = y_hi - mean
            var = batch_sum(c_lo * c_lo, c_hi * c_hi) * (1.0 / B)
            g = aff_ref[l, 0, :, :] * jax.lax.rsqrt(var + BN_EPS)   # fold gamma * inv_std once
            b_aff = aff_ref[l, 1, :, :]
            z_lo = c_lo * g + b_aff
            z_hi = c_hi * g + b_aff

            # LeakyReLU(0.1) as max(z, 0.1*z).
            # TODO(synk): nn.Dropout treated as identity.
            return jnp.maximum(z_lo, LEAKY_SLOPE * z_lo), jnp.maximum(z_hi, LEAKY_SLOPE * z_hi)

        y_lo, y_hi = layer(x_lo, x_hi, 0)
        y_lo, y_hi = layer(y_lo, y_hi, 1)
        # Residual + store: two 128-lane, vreg-aligned, unmasked lane-dense stores.
        o_ref[:, :H] = (y_lo + x_lo).astype(o_ref.dtype)
        o_ref[:, H:] = (y_hi + x_hi).astype(o_ref.dtype)

    return kernel


def _full_spec(shape):
    # Block == full array (legal regardless of (8,128) divisibility).
    return pl.BlockSpec(shape, lambda i: (0,) * len(shape))


def pack_gc_block_params(params, batch):
    """Pack per-layer parameters into three small lane-dense slabs (done once).

    The GraphConvolution biases are intentionally NOT packed: with training-mode
    BatchNorm (batch statistics) a per-(n,f) constant added before BN has exactly
    zero effect on the block output.
    """
    B = batch
    assert B >= 2 and (B & (B - 1)) == 0, "packing is specialized to power-of-two batch"
    N, F = params['gamma1'].shape
    Bh = B // 2
    eye_h = jnp.eye(Bh, dtype=jnp.float32)

    def one_layer(w, gamma, beta):
        w_half = jnp.kron(eye_h, w)           # (Bh*F, Bh*F): shared diagonal block of kron(I_B, W)
        gamma_h = jnp.tile(gamma, (1, Bh))    # (N, Bh*F)
        beta_h = jnp.tile(beta, (1, Bh))      # (N, Bh*F)
        return w_half, jnp.stack([gamma_h, beta_h])

    w1, aff1 = one_layer(params['w1'], params['gamma1'], params['beta1'])
    w2, aff2 = one_layer(params['w2'], params['gamma2'], params['beta2'])
    return dict(w=jnp.stack([w1, w2]),                              # (2, Bh*F, Bh*F)
                att=jnp.stack([params['att1'], params['att2']]),    # (2, N, N)
                affine=jnp.stack([aff1, aff2]))                     # (2, 2, N, Bh*F)


@jax.jit
def gc_block_forward(x, packed):
    B, N, F = x.shape
    # Present node-major, lane-dense I/O to the kernel; transpose once in the wrapper.
    x_nm = jnp.transpose(x, (1, 0, 2)).reshape(N, B * F)
    args = (x_nm, packed['w'], packed['att'], packed['affine'])
    out_nm = pl.pallas_call(
        _make_gc_block_kernel(B, N, F),
        out_shape=jax.ShapeDtypeStruct((N, B * F), jnp.float32),
        grid=(1,),
        in_specs=[_full_spec(a.shape) for a in args],
        out_specs=_full_spec((N, B * F)),
        input_output_aliases={0: 0},   # activation slab is fully read before the final store
        compiler_params=pltpu.CompilerParams(dimension_semantics=("arbitrary",)),
    )(*args)
    return out_nm.reshape(N, B, F).transpose(1, 0, 2)


def init_params(key, in_features, node_n):
    """Matches GraphConvolution.reset_parameters (uniform(-stdv, stdv)) and
    BatchNorm1d defaults (weight=1, bias=0)."""
    stdv = 1.0 / math.sqrt(in_features)
    ks = jax.random.split(key, 6)

    def u(k, shape):
        return jax.random.uniform(k, shape, jnp.float32, minval=-stdv, maxval=stdv)

    return dict(
        w1=u(ks[0], (in_features, in_features)),
        att1=u(ks[1], (node_n, node_n)),
        b1=u(ks[2], (in_features,)),
        gamma1=jnp.ones((node_n, in_features), jnp.float32),
        beta1=jnp.zeros((node_n, in_features), jnp.float32),
        w2=u(ks[3], (in_features, in_features)),
        att2=u(ks[4], (node_n, node_n)),
        b2=u(ks[5], (in_features,)),
        gamma2=jnp.ones((node_n, in_features), jnp.float32),
        beta2=jnp.zeros((node_n, in_features), jnp.float32),
    )


def gc_block_reference(x, p):
    """Plain-JAX reference mirroring the PyTorch forward (dropout = identity).
    Note it keeps the GraphConvolution bias; the kernel drops it because training-mode
    BatchNorm cancels it exactly -- the tolerance check below confirms this."""
    def gc(h, w, att, b):
        return jnp.matmul(att, jnp.matmul(h, w)) + b

    def bn_leaky(h, gamma, beta):
        B, N, F = h.shape
        hf = h.reshape(B, N * F)
        mean = hf.mean(axis=0, keepdims=True)
        var = jnp.square(hf - mean).mean(axis=0, keepdims=True)
        hn = (hf - mean) / jnp.sqrt(var + BN_EPS)
        hn = hn * gamma.reshape(1, -1) + beta.reshape(1, -1)
        hn = hn.reshape(B, N, F)
        return jnp.where(hn >= 0, hn, LEAKY_SLOPE * hn)

    y = gc(x, p['w1'], p['att1'], p['b1'])
    y = bn_leaky(y, p['gamma1'], p['beta1'])
    y = gc(y, p['w2'], p['att2'], p['b2'])
    y = bn_leaky(y, p['gamma2'], p['beta2'])
    return y + x


if __name__ == "__main__":
    B, NODE_N, IN_FEATURES = 8, 48, 32

    key = jax.random.PRNGKey(0)
    k_x, k_p = jax.random.split(key)
    x = jax.random.normal(k_x, (B, NODE_N, IN_FEATURES), jnp.float32)
    params = init_params(k_p, IN_FEATURES, NODE_N)
    packed = pack_gc_block_params(params, B)

    out = gc_block_forward(x, packed)
    out = jax.block_until_ready(out)

    ref = gc_block_reference(x, params)
    assert out.shape == (B, NODE_N, IN_FEATURES)
    assert jnp.allclose(out, ref, rtol=1e-4, atol=1e-4), \
        f"max abs err {jnp.max(jnp.abs(out - ref))}"

    print("KERNEL_OK")
</pallas_src>

<mosaic_0001>
module attributes {stable_mosaic.version = 11 : i64} {
  func.func @kernel(%arg0: i32, %arg1: memref<48x256xf32, #tpu.memory_space<vmem>>, %arg2: memref<2x128x128xf32, #tpu.memory_space<vmem>>, %arg3: memref<2x48x48xf32, #tpu.memory_space<vmem>>, %arg4: memref<2x2x48x128xf32, #tpu.memory_space<vmem>>, %arg5: memref<48x256xf32, #tpu.memory_space<vmem>>) attributes {dimension_semantics = [#tpu.dimension_semantics<arbitrary>], iteration_bounds = array<i64: 1>, scalar_prefetch = 0 : i64, scratch_operands = 0 : i64, tpu.core_type = #tpu.core_type<tc>, window_params = [{pipeline_mode = #tpu.pipeline_mode<synchronous>, transform_indices = @transform_0, window_bounds = array<i64: 48, 256>}, {pipeline_mode = #tpu.pipeline_mode<synchronous>, transform_indices = @transform_1, window_bounds = array<i64: 2, 128, 128>}, {pipeline_mode = #tpu.pipeline_mode<synchronous>, transform_indices = @transform_2, window_bounds = array<i64: 2, 48, 48>}, {pipeline_mode = #tpu.pipeline_mode<synchronous>, transform_indices = @transform_3, window_bounds = array<i64: 2, 2, 48, 128>}, {pipeline_mode = #tpu.pipeline_mode<synchronous>, transform_indices = @transform_4, window_bounds = array<i64: 48, 256>}]} {
    %c0 = arith.constant 0 : index
    %c0_0 = arith.constant 0 : index
    %0 = vector.load %arg1[%c0, %c0_0] : memref<48x256xf32, #tpu.memory_space<vmem>>, vector<48x128xf32>
    %c0_1 = arith.constant 0 : index
    %c128 = arith.constant 128 : index
    %1 = vector.load %arg1[%c0_1, %c128] : memref<48x256xf32, #tpu.memory_space<vmem>>, vector<48x128xf32>
    %c0_2 = arith.constant 0 : index
    %c0_3 = arith.constant 0 : index
    %c0_4 = arith.constant 0 : index
    %2 = vector.load %arg2[%c0_2, %c0_3, %c0_4] : memref<2x128x128xf32, #tpu.memory_space<vmem>>, vector<1x128x128xf32>
    %3 = vector.shape_cast %2 : vector<1x128x128xf32> to vector<128x128xf32>
    %c0_5 = arith.constant 0 : index
    %c0_6 = arith.constant 0 : index
    %c0_7 = arith.constant 0 : index
    %4 = vector.load %arg3[%c0_5, %c0_6, %c0_7] : memref<2x48x48xf32, #tpu.memory_space<vmem>>, vector<1x48x48xf32>
    %5 = vector.shape_cast %4 : vector<1x48x48xf32> to vector<48x48xf32>
    %cst = arith.constant dense<0.000000e+00> : vector<48x128xf32>
    %6 = tpu.matmul %0, %3, %cst {dimension_numbers = #tpu.dot_dimension_numbers<[1], [0], [0], [1], [0, 0, 1, 1], [], []>} : vector<48x128xf32>, vector<128x128xf32>, vector<48x128xf32> -> vector<48x128xf32>
    %cst_8 = arith.constant dense<0.000000e+00> : vector<48x128xf32>
    %7 = tpu.matmul %1, %3, %cst_8 {dimension_numbers = #tpu.dot_dimension_numbers<[1], [0], [0], [1], [0, 0, 1, 1], [], []>} : vector<48x128xf32>, vector<128x128xf32>, vector<48x128xf32> -> vector<48x128xf32>
    %cst_9 = arith.constant dense<0.000000e+00> : vector<48x128xf32>
    %8 = tpu.matmul %5, %6, %cst_9 {dimension_numbers = #tpu.dot_dimension_numbers<[1], [0], [0], [1], [0, 0, 1, 1], [], []>} : vector<48x48xf32>, vector<48x128xf32>, vector<48x128xf32> -> vector<48x128xf32>
    %cst_10 = arith.constant dense<0.000000e+00> : vector<48x128xf32>
    %9 = tpu.matmul %5, %7, %cst_10 {dimension_numbers = #tpu.dot_dimension_numbers<[1], [0], [0], [1], [0, 0, 1, 1], [], []>} : vector<48x48xf32>, vector<48x128xf32>, vector<48x128xf32> -> vector<48x128xf32>
    %10 = arith.addf %8, %9 : vector<48x128xf32>
    %c32_i32 = arith.constant 32 : i32
    %11 = tpu.dynamic_rotate %10 by %c32_i32 dim 1 : vector<48x128xf32>, i32 -> vector<48x128xf32>
    %12 = arith.addf %10, %11 : vector<48x128xf32>
    %c64_i32 = arith.constant 64 : i32
    %13 = tpu.dynamic_rotate %12 by %c64_i32 dim 1 : vector<48x128xf32>, i32 -> vector<48x128xf32>
    %14 = arith.addf %12, %13 : vector<48x128xf32>
    %cst_11 = arith.constant 1.250000e-01 : f32
    %15 = vector.broadcast %cst_11 : f32 to vector<48x128xf32>
    %16 = arith.mulf %14, %15 : vector<48x128xf32>
    %17 = arith.subf %8, %16 : vector<48x128xf32>
    %18 = arith.subf %9, %16 : vector<48x128xf32>
    %19 = arith.mulf %17, %17 : vector<48x128xf32>
    %20 = arith.mulf %18, %18 : vector<48x128xf32>
    %21 = arith.addf %19, %20 : vector<48x128xf32>
    %c32_i32_12 = arith.constant 32 : i32
    %22 = tpu.dynamic_rotate %21 by %c32_i32_12 dim 1 : vector<48x128xf32>, i32 -> vector<48x128xf32>
    %23 = arith.addf %21, %22 : vector<48x128xf32>
    %c64_i32_13 = arith.constant 64 : i32
    %24 = tpu.dynamic_rotate %23 by %c64_i32_13 dim 1 : vector<48x128xf32>, i32 -> vector<48x128xf32>
    %25 = arith.addf %23, %24 : vector<48x128xf32>
    %cst_14 = arith.constant 1.250000e-01 : f32
    %26 = vector.broadcast %cst_14 : f32 to vector<48x128xf32>
    %27 = arith.mulf %25, %26 : vector<48x128xf32>
    %c0_15 = arith.constant 0 : index
    %c0_16 = arith.constant 0 : index
    %c0_17 = arith.constant 0 : index
    %c0_18 = arith.constant 0 : index
    %28 = vector.load %arg4[%c0_15, %c0_16, %c0_17, %c0_18] : memref<2x2x48x128xf32, #tpu.memory_space<vmem>>, vector<1x1x48x128xf32>
    %29 = vector.shape_cast %28 : vector<1x1x48x128xf32> to vector<48x128xf32>
    %cst_19 = arith.constant 9.99999974E-6 : f32
    %30 = vector.broadcast %cst_19 : f32 to vector<48x128xf32>
    %31 = arith.addf %27, %30 : vector<48x128xf32>
    %32 = math.rsqrt %31 : vector<48x128xf32>
    %33 = arith.mulf %29, %32 : vector<48x128xf32>
    %c0_20 = arith.constant 0 : index
    %c1 = arith.constant 1 : index
    %c0_21 = arith.constant 0 : index
    %c0_22 = arith.constant 0 : index
    %34 = vector.load %arg4[%c0_20, %c1, %c0_21, %c0_22] : memref<2x2x48x128xf32, #tpu.memory_space<vmem>>, vector<1x1x48x128xf32>
    %35 = vector.shape_cast %34 : vector<1x1x48x128xf32> to vector<48x128xf32>
    %36 = arith.mulf %17, %33 : vector<48x128xf32>
    %37 = arith.addf %36, %35 : vector<48x128xf32>
    %38 = arith.mulf %18, %33 : vector<48x128xf32>
    %39 = arith.addf %38, %35 : vector<48x128xf32>
    %cst_23 = arith.constant 1.000000e-01 : f32
    %40 = vector.broadcast %cst_23 : f32 to vector<48x128xf32>
    %41 = arith.mulf %40, %37 : vector<48x128xf32>
    %42 = arith.maximumf %37, %41 : vector<48x128xf32>
    %cst_24 = arith.constant 1.000000e-01 : f32
    %43 = vector.broadcast %cst_24 : f32 to vector<48x128xf32>
    %44 = arith.mulf %43, %39 : vector<48x128xf32>
    %45 = arith.maximumf %39, %44 : vector<48x128xf32>
    %c1_25 = arith.constant 1 : index
    %c0_26 = arith.constant 0 : index
    %c0_27 = arith.constant 0 : index
    %46 = vector.load %arg2[%c1_25, %c0_26, %c0_27] : memref<2x128x128xf32, #tpu.memory_space<vmem>>, vector<1x128x128xf32>
    %47 = vector.shape_cast %46 : vector<1x128x128xf32> to vector<128x128xf32>
    %c1_28 = arith.constant 1 : index
    %c0_29 = arith.constant 0 : index
    %c0_30 = arith.constant 0 : index
    %48 = vector.load %arg3[%c1_28, %c0_29, %c0_30] : memref<2x48x48xf32, #tpu.memory_space<vmem>>, vector<1x48x48xf32>
    %49 = vector.shape_cast %48 : vector<1x48x48xf32> to vector<48x48xf32>
    %cst_31 = arith.constant dense<0.000000e+00> : vector<48x128xf32>
    %50 = tpu.matmul %42, %47, %cst_31 {dimension_numbers = #tpu.dot_dimension_numbers<[1], [0], [0], [1], [0, 0, 1, 1], [], []>} : vector<48x128xf32>, vector<128x128xf32>, vector<48x128xf32> -> vector<48x128xf32>
    %cst_32 = arith.constant dense<0.000000e+00> : vector<48x128xf32>
    %51 = tpu.matmul %45, %47, %cst_32 {dimension_numbers = #tpu.dot_dimension_numbers<[1], [0], [0], [1], [0, 0, 1, 1], [], []>} : vector<48x128xf32>, vector<128x128xf32>, vector<48x128xf32> -> vector<48x128xf32>
    %cst_33 = arith.constant dense<0.000000e+00> : vector<48x128xf32>
    %52 = tpu.matmul %49, %50, %cst_33 {dimension_numbers = #tpu.dot_dimension_numbers<[1], [0], [0], [1], [0, 0, 1, 1], [], []>} : vector<48x48xf32>, vector<48x128xf32>, vector<48x128xf32> -> vector<48x128xf32>
    %cst_34 = arith.constant dense<0.000000e+00> : vector<48x128xf32>
    %53 = tpu.matmul %49, %51, %cst_34 {dimension_numbers = #tpu.dot_dimension_numbers<[1], [0], [0], [1], [0, 0, 1, 1], [], []>} : vector<48x48xf32>, vector<48x128xf32>, vector<48x128xf32> -> vector<48x128xf32>
    %54 = arith.addf %52, %53 : vector<48x128xf32>
    %c32_i32_35 = arith.constant 32 : i32
    %55 = tpu.dynamic_rotate %54 by %c32_i32_35 dim 1 : vector<48x128xf32>, i32 -> vector<48x128xf32>
    %56 = arith.addf %54, %55 : vector<48x128xf32>
    %c64_i32_36 = arith.constant 64 : i32
    %57 = tpu.dynamic_rotate %56 by %c64_i32_36 dim 1 : vector<48x128xf32>, i32 -> vector<48x128xf32>
    %58 = arith.addf %56, %57 : vector<48x128xf32>
    %cst_37 = arith.constant 1.250000e-01 : f32
    %59 = vector.broadcast %cst_37 : f32 to vector<48x128xf32>
    %60 = arith.mulf %58, %59 : vector<48x128xf32>
    %61 = arith.subf %52, %60 : vector<48x128xf32>
    %62 = arith.subf %53, %60 : vector<48x128xf32>
    %63 = arith.mulf %61, %61 : vector<48x128xf32>
    %64 = arith.mulf %62, %62 : vector<48x128xf32>
    %65 = arith.addf %63, %64 : vector<48x128xf32>
    %c32_i32_38 = arith.constant 32 : i32
    %66 = tpu.dynamic_rotate %65 by %c32_i32_38 dim 1 : vector<48x128xf32>, i32 -> vector<48x128xf32>
    %67 = arith.addf %65, %66 : vector<48x128xf32>
    %c64_i32_39 = arith.constant 64 : i32
    %68 = tpu.dynamic_rotate %67 by %c64_i32_39 dim 1 : vector<48x128xf32>, i32 -> vector<48x128xf32>
    %69 = arith.addf %67, %68 : vector<48x128xf32>
    %cst_40 = arith.constant 1.250000e-01 : f32
    %70 = vector.broadcast %cst_40 : f32 to vector<48x128xf32>
    %71 = arith.mulf %69, %70 : vector<48x128xf32>
    %c1_41 = arith.constant 1 : index
    %c0_42 = arith.constant 0 : index
    %c0_43 = arith.constant 0 : index
    %c0_44 = arith.constant 0 : index
    %72 = vector.load %arg4[%c1_41, %c0_42, %c0_43, %c0_44] : memref<2x2x48x128xf32, #tpu.memory_space<vmem>>, vector<1x1x48x128xf32>
    %73 = vector.shape_cast %72 : vector<1x1x48x128xf32> to vector<48x128xf32>
    %cst_45 = arith.constant 9.99999974E-6 : f32
    %74 = vector.broadcast %cst_45 : f32 to vector<48x128xf32>
    %75 = arith.addf %71, %74 : vector<48x128xf32>
    %76 = math.rsqrt %75 : vector<48x128xf32>
    %77 = arith.mulf %73, %76 : vector<48x128xf32>
    %c1_46 = arith.constant 1 : index
    %c1_47 = arith.constant 1 : index
    %c0_48 = arith.constant 0 : index
    %c0_49 = arith.constant 0 : index
    %78 = vector.load %arg4[%c1_46, %c1_47, %c0_48, %c0_49] : memref<2x2x48x128xf32, #tpu.memory_space<vmem>>, vector<1x1x48x128xf32>
    %79 = vector.shape_cast %78 : vector<1x1x48x128xf32> to vector<48x128xf32>
    %80 = arith.mulf %61, %77 : vector<48x128xf32>
    %81 = arith.addf %80, %79 : vector<48x128xf32>
    %82 = arith.mulf %62, %77 : vector<48x128xf32>
    %83 = arith.addf %82, %79 : vector<48x128xf32>
    %cst_50 = arith.constant 1.000000e-01 : f32
    %84 = vector.broadcast %cst_50 : f32 to vector<48x128xf32>
    %85 = arith.mulf %84, %81 : vector<48x128xf32>
    %86 = arith.maximumf %81, %85 : vector<48x128xf32>
    %cst_51 = arith.constant 1.000000e-01 : f32
    %87 = vector.broadcast %cst_51 : f32 to vector<48x128xf32>
    %88 = arith.mulf %87, %83 : vector<48x128xf32>
    %89 = arith.maximumf %83, %88 : vector<48x128xf32>
    %90 = arith.addf %86, %0 : vector<48x128xf32>
    %c0_52 = arith.constant 0 : index
    %c0_53 = arith.constant 0 : index
    %91 = vector.load %arg5[%c0_52, %c0_53] : memref<48x256xf32, #tpu.memory_space<vmem>>, vector<48x128xf32>
    tpu.vector_store %arg5[%c0_52, %c0_53], %90 {strides = array<i32>} : memref<48x256xf32, #tpu.memory_space<vmem>>, vector<48x128xf32>,
    %92 = arith.addf %89, %1 : vector<48x128xf32>
    %c0_54 = arith.constant 0 : index
    %c128_55 = arith.constant 128 : index
    %93 = vector.load %arg5[%c0_54, %c128_55] : memref<48x256xf32, #tpu.memory_space<vmem>>, vector<48x128xf32>
    tpu.vector_store %arg5[%c0_54, %c128_55], %92 {strides = array<i32>} : memref<48x256xf32, #tpu.memory_space<vmem>>, vector<48x128xf32>,
    return
  }
  func.func @transform_0(%arg0: i32) -> (i32, i32) {
    %c0_i32 = arith.constant 0 : i32
    %c0_i32_0 = arith.constant 0 : i32
    %c0_i32_1 = arith.constant 0 : i32
    return %c0_i32, %c0_i32_0 : i32, i32
  }
  func.func @transform_1(%arg0: i32) -> (i32, i32, i32) {
    %c0_i32 = arith.constant 0 : i32
    %c0_i32_0 = arith.constant 0 : i32
    %c0_i32_1 = arith.constant 0 : i32
    %c0_i32_2 = arith.constant 0 : i32
    return %c0_i32, %c0_i32_0, %c0_i32_1 : i32, i32, i32
  }
  func.func @transform_2(%arg0: i32) -> (i32, i32, i32) {
    %c0_i32 = arith.constant 0 : i32
    %c0_i32_0 = arith.constant 0 : i32
    %c0_i32_1 = arith.constant 0 : i32
    %c0_i32_2 = arith.constant 0 : i32
    return %c0_i32, %c0_i32_0, %c0_i32_1 : i32, i32, i32
  }
  func.func @transform_3(%arg0: i32) -> (i32, i32, i32, i32) {
    %c0_i32 = arith.constant 0 : i32
    %c0_i32_0 = arith.constant 0 : i32
    %c0_i32_1 = arith.constant 0 : i32
    %c0_i32_2 = arith.constant 0 : i32
    %c0_i32_3 = arith.constant 0 : i32
    return %c0_i32, %c0_i32_0, %c0_i32_1, %c0_i32_2 : i32, i32, i32, i32
  }
  func.func @transform_4(%arg0: i32) -> (i32, i32) {
    %c0_i32 = arith.constant 0 : i32
    %c0_i32_0 = arith.constant 0 : i32
    %c0_i32_1 = arith.constant 0 : i32
    return %c0_i32, %c0_i32_0 : i32, i32
  }
}

</mosaic_0001>

<bundles_post_ra>
// kernel: gc_block_forward.1
= control target key start
LH: loop header
LB: loop body
LE: loop exit
PB: predicated region body
PF: predicated region fallthrough
CT: control target
= control target key end

     0   :  { %9 = vsyncpa [#allocation3], 0  ;;  %s1985_s15 = smov [#allocation2]   ;;  %s2491_s0 = inlined_call_operand.vmem [shape: f32[48,256], index: 0, kind: input, shape index: {}, may-alias: {0,4}]   ;;  %s2492_s1 = inlined_call_operand.vmem [shape: f32[2,128,128], index: 1, kind: input, shape index: {}]   ;;  %s2493_s2 = inlined_call_operand.vmem [shape: f32[2,48,48], index: 2, kind: input, shape index: {}]   ;;  %s2494_s3 = inlined_call_operand.hbm [shape: f32[2,2,48,128], index: 3, kind: input, shape index: {}]   ;;  %s2495_s4 = inlined_call_operand.vmem [shape: f32[48,256], index: 4, kind: output, shape index: {}, may-alias: {0,4}]  }
   0x1   :  { %s21_s16 = sshll.u32 %s1985_s15, 4  ;;  %s1961_s19 = scalar_lea.hbm %s2494_s3, 3072  ;;  %s22_s16 = int_to_ptr.vmem [resolvable:$true] %s21_s16 }
   0x2   :  { %p1962_p0 = scmp.ne.s32.totalorder %s2494_s3, %s1961_s19  ;;  %p1965_p1 = scmp.lt.u32.totalorder %s1961_s19, %s2494_s3 }
   0x4   :  { %p1967_p2 = pnand %p1965_p1, %p1962_p0 }
   0x6   :  { %1970 = shalt.err (!%p1967_p2)
}
   0x7   :  { %s1971_s24 = scalar_lea.vmem %s22_s16, 3072  ;;  %p1976_p4 = scmp.lt.s32.totalorder %s22_s16, %s22_s16 }
   0x8   :  { %p1972_p3 = scmp.ne.s32.totalorder %s22_s16, %s1971_s24  ;;  %p1977_p5 = scmp.lt.s32.totalorder %s1971_s24, %s1971_s24 }
   0xa   :  { %p1978_p6 = por %p1977_p5, %p1976_p4 }
   0xc   :  { %p1979_p7 = pnand %p1978_p6, %p1972_p3 }
   0xe   :  { %1982 = shalt.err (!%p1979_p7)
}
   0xf   :  { %s1986_s25 = smov 128   ;;  %s1987_s26 = smov 8  }
  0x10   :  { %27 = dma.hbm_to_vmem [thread:$0]  %s2494_s3, 3072, %s22_s16, [#allocation3], %s1986_s25, %s1986_s25, %s1987_s26  }
  0x11   :  { %1983 = dma.done.wait [#allocation3], 3072  }
  0x12   :  { %1984 = vsyncadd [#allocation3], 4294964224  ;;  %v43_v0 = vld [vmem:[%s2492_s1] sm:$0xff]  ;;  %v44_v1 = vld [vmem:[%s2492_s1 + $0x8] sm:$0xff]  ;;  %vm255_vm0 = vcmask 392192   ;;  %s1988_s16 = smov 32  }
  0x13   :  { %v45_v2 = vld [vmem:[%s2492_s1 + $0x10] sm:$0xff]  ;;  %v1744_v3 = vpack.c.bf16 %v44_v1, %v43_v0  ;;  %v46_v4 = vld [vmem:[%s2492_s1 + $0x18] sm:$0xff]  ;;  %v47_v6 = vld [vmem:[%s2492_s1 + $0x20] sm:$0xff]  ;;  %s1989_s17 = smov 64  }
  0x14   :  { %v1748_v5 = vpack.c.bf16 %v46_v4, %v45_v2  ;;  %v48_v7 = vld [vmem:[%s2492_s1 + $0x28] sm:$0xff]  ;;  %v31_v9 = vld [vmem:[%s2491_s0] sm:$0xff]  ;;  %v49_v11 = vld [vmem:[%s2492_s1 + $0x30] sm:$0xff] }
  0x15   :  { %1745 = vmatprep.subr.bf16.mxu0 %v1744_v3  ;;  %1777 = vmatprep.subr.bf16.mxu1 %v1744_v3  ;;  %v1752_v8 = vpack.c.bf16 %v48_v7, %v47_v6  ;;  %v37_v10 = vld [vmem:[%s2491_s0 + $0x8] sm:$0xff]  ;;  %v50_v12 = vld [vmem:[%s2492_s1 + $0x38] sm:$0xff]  ;;  %v51_v14 = vld [vmem:[%s2492_s1 + $0x40] sm:$0xff] }
  0x16   :  { %1747 = vmatpush3.bf16.msra.mxu0 %v1744_v3  ;;  %1779 = vmatpush3.bf16.msra.mxu1 %v1744_v3  ;;  %v1756_v13 = vpack.c.bf16 %v50_v12, %v49_v11  ;;  %v52_v15 = vld [vmem:[%s2492_s1 + $0x48] sm:$0xff]  ;;  %v53_v17 = vld [vmem:[%s2492_s1 + $0x50] sm:$0xff]  ;;  %v54_v18 = vld [vmem:[%s2492_s1 + $0x58] sm:$0xff] }
  0x17   :  { %1749 = vmatprep.subr.bf16.mxu0 %v1748_v5  ;;  %1781 = vmatprep.subr.bf16.mxu1 %v1748_v5  ;;  %v1760_v16 = vpack.c.bf16 %v52_v15, %v51_v14  ;;  %v1764_v19 = vpack.c.bf16 %v54_v18, %v53_v17  ;;  %v55_v20 = vld [vmem:[%s2492_s1 + $0x60] sm:$0xff]  ;;  %v56_v21 = vld [vmem:[%s2492_s1 + $0x68] sm:$0xff]  ;;  %v57_v23 = vld [vmem:[%s2492_s1 + $0x70] sm:$0xff] }
  0x18   :  { %1528 = vmatprep.mubr.f32.mxu0 %v31_v9  ;;  %1569 = vmatprep.mubr.f32.mxu1 %v37_v10  ;;  %v1768_v22 = vpack.c.bf16 %v56_v21, %v55_v20  ;;  %v58_v24 = vld [vmem:[%s2492_s1 + $0x78] sm:$0xff]  ;;  %v32_v26 = vld [vmem:[%s2491_s0 + $0x10] sm:$0xff]  ;;  %v33_v28 = vld [vmem:[%s2491_s0 + $0x20] sm:$0xff] }
  0x19   :  { %v1772_v25 = vpack.c.bf16 %v58_v24, %v57_v23  ;;  %v38_v27 = vld [vmem:[%s2491_s0 + $0x18] sm:$0xff]  ;;  %v39_v29 = vld [vmem:[%s2491_s0 + $0x28] sm:$0xff]  ;;  %v34_v30 = vld [vmem:[%s2491_s0 + $0x30] sm:$0xff] }
  0x1a   :  { %1751 = vmatpush3.bf16.msra.mxu0 %v1748_v5  ;;  %1783 = vmatpush3.bf16.msra.mxu1 %v1748_v5  ;;  %v40_v31 = vld [vmem:[%s2491_s0 + $0x38] sm:$0xff]  ;;  %v35_v32 = vld [vmem:[%s2491_s0 + $0x40] sm:$0xff]  ;;  %v41_v33 = vld [vmem:[%s2491_s0 + $0x48] sm:$0xff] }
  0x1b   :  { %1753 = vmatprep.subr.bf16.mxu0 %v1752_v8  ;;  %1785 = vmatprep.subr.bf16.mxu1 %v1752_v8  ;;  %v36_v34 = vld [vmem:[%s2491_s0 + $0x50] sm:$0xff]  ;;  %v42_v35 = vld [vmem:[%s2491_s0 + $0x58] sm:$0xff]  ;;  %v59_v36 = vld [vmem:[%s2493_s2] sm:$0xff] }
  0x1c   :  { %v60_v55 = vld [vmem:[%s2493_s2 + $0x8] sm:$0xff]  ;;  %v61_v56 = vld [vmem:[%s2493_s2 + $0x10] sm:$0xff]  ;;  %v62_v57 = vld [vmem:[%s2493_s2 + $0x18] sm:$0xff] }
  0x1d   :  { %v63_v58 = vld [vmem:[%s2493_s2 + $0x20] sm:$0xff]  ;;  %v64_v59 = vld [vmem:[%s2493_s2 + $0x28] sm:$0xff] }
  0x1e   :  { %1755 = vmatpush3.bf16.msra.mxu0 %v1752_v8  ;;  %1787 = vmatpush3.bf16.msra.mxu1 %v1752_v8 }
  0x1f   :  { %1757 = vmatprep.subr.bf16.mxu0 %v1756_v13  ;;  %1789 = vmatprep.subr.bf16.mxu1 %v1756_v13 }
  0x22   :  { %1759 = vmatpush3.bf16.msra.mxu0 %v1756_v13  ;;  %1791 = vmatpush3.bf16.msra.mxu1 %v1756_v13 }
  0x23   :  { %1761 = vmatprep.subr.bf16.mxu0 %v1760_v16  ;;  %1793 = vmatprep.subr.bf16.mxu1 %v1760_v16 }
  0x26   :  { %1763 = vmatpush3.bf16.msra.mxu0 %v1760_v16  ;;  %1795 = vmatpush3.bf16.msra.mxu1 %v1760_v16 }
  0x27   :  { %1765 = vmatprep.subr.bf16.mxu0 %v1764_v19  ;;  %1797 = vmatprep.subr.bf16.mxu1 %v1764_v19 }
  0x2a   :  { %1767 = vmatpush3.bf16.msra.mxu0 %v1764_v19  ;;  %1799 = vmatpush3.bf16.msra.mxu1 %v1764_v19 }
  0x2b   :  { %1769 = vmatprep.subr.bf16.mxu0 %v1768_v22  ;;  %1801 = vmatprep.subr.bf16.mxu1 %v1768_v22 }
  0x2e   :  { %1771 = vmatpush3.bf16.msra.mxu0 %v1768_v22  ;;  %1803 = vmatpush3.bf16.msra.mxu1 %v1768_v22 }
  0x2f   :  { %1773 = vmatprep.subr.bf16.mxu0 %v1772_v25  ;;  %1805 = vmatprep.subr.bf16.mxu1 %v1772_v25 }
  0x32   :  { %1775 = vmatpush3.bf16.msra.mxu0 %v1772_v25  ;;  %1807 = vmatpush3.bf16.msra.mxu1 %v1772_v25 }
  0x35   :  { %1529 = vmatmul.mubr.f32.vlgmr.msra.gmra.mrb[0].mxu0 %v32_v26  ;;  %1570 = vmatmul.mubr.f32.vlgmr.msra.gmra.mrb[0].mxu1 %v38_v27 }
  0x36   :  { %1531 = vmatprep.mubr.f32.mxu0 %v33_v28  ;;  %1572 = vmatprep.mubr.f32.mxu1 %v39_v29 }
  0x39   :  { %1532 = vmatmul.mubr.f32.gmra.mrb[2].mxu0 %v34_v30  ;;  %1573 = vmatmul.mubr.f32.gmra.mrb[2].mxu1 %v40_v31 }
  0x3a   :  { %1534 = vmatprep.mubr.f32.mxu0 %v35_v32  ;;  %1575 = vmatprep.mubr.f32.mxu1 %v41_v33 }
  0x3d   :  { %1535 = vmatmul.mubr.f32.gmra.mrb[4].mxu0 %v36_v34  ;;  %1576 = vmatmul.mubr.f32.gmra.mrb[4].mxu1 %v42_v35 }
  0x3e   :  { %1590 = vmatprep.mubr.msk.f32.mxu0 %vm255_vm0, %v59_v36  ;;  %1611 = vmatprep.mubr.msk.f32.mxu1 %vm255_vm0, %v59_v36 }
 0x108   :  { %v1530_v37 = vpop.f32.mrb[0].mxu0  ;;  %v1571_v38 = vpop.f32.mrb[0].mxu1 }
 0x109   :  { %v131_v39 = vpop.f32.mrb[1].mxu0  ;;  %v226_v40 = vpop.f32.mrb[1].mxu1 }
 0x10a   :  { %v1808_v41 = vpack.c.bf16 %v1530_v37, %v131_v39  ;;  %v1820_v42 = vpack.c.bf16 %v1571_v38, %v226_v40 }
 0x10c   :  { %v1533_v43 = vpop.f32.mrb[2].mxu0  ;;  %v1574_v44 = vpop.f32.mrb[2].mxu1  ;;  %1809 = vmatprep.subr.bf16.mxu0 %v1808_v41  ;;  %1821 = vmatprep.subr.bf16.mxu1 %v1820_v42 }
 0x10d   :  { %v141_v45 = vpop.f32.mrb[3].mxu0  ;;  %v236_v46 = vpop.f32.mrb[3].mxu1  ;;  %1811 = vmatpush3.bf16.msra.mxu0 %v1808_v41  ;;  %1823 = vmatpush3.bf16.msra.mxu1 %v1820_v42 }
 0x10e   :  { %v1812_v47 = vpack.c.bf16 %v1533_v43, %v141_v45  ;;  %v1824_v48 = vpack.c.bf16 %v1574_v44, %v236_v46 }
 0x110   :  { %v1536_v49 = vpop.f32.mrb[4].mxu0  ;;  %v1577_v50 = vpop.f32.mrb[4].mxu1  ;;  %1813 = vmatprep.subr.bf16.mxu0 %v1812_v47  ;;  %1825 = vmatprep.subr.bf16.mxu1 %v1824_v48 }
 0x111   :  { %v151_v51 = vpop.f32.mrb[5].mxu0  ;;  %v246_v52 = vpop.f32.mrb[5].mxu1  ;;  %1815 = vmatpush3.bf16.msra.mxu0 %v1812_v47  ;;  %1827 = vmatpush3.bf16.msra.mxu1 %v1824_v48 }
 0x112   :  { %v1816_v53 = vpack.c.bf16 %v1536_v49, %v151_v51  ;;  %v1828_v54 = vpack.c.bf16 %v1577_v50, %v246_v52 }
 0x114   :  { %1817 = vmatprep.subr.bf16.mxu0 %v1816_v53  ;;  %1829 = vmatprep.subr.bf16.mxu1 %v1828_v54 }
 0x115   :  { %1819 = vmatpush3.bf16.msra.mxu0 %v1816_v53  ;;  %1831 = vmatpush3.bf16.msra.mxu1 %v1828_v54 }
 0x118   :  { %1591 = vmatmul.mubr.msk.f32.vlgmr.msra.gmra.mrb[6].mxu0 %vm255_vm0, %v60_v55  ;;  %1612 = vmatmul.mubr.msk.f32.vlgmr.msra.gmra.mrb[6].mxu1 %vm255_vm0, %v60_v55 }
 0x119   :  { %1593 = vmatprep.mubr.msk.f32.mxu0 %vm255_vm0, %v61_v56  ;;  %1614 = vmatprep.mubr.msk.f32.mxu1 %vm255_vm0, %v61_v56 }
 0x11c   :  { %1594 = vmatmul.mubr.msk.f32.gmra.mrb[8].mxu0 %vm255_vm0, %v62_v57  ;;  %1615 = vmatmul.mubr.msk.f32.gmra.mrb[8].mxu1 %vm255_vm0, %v62_v57 }
 0x11d   :  { %1596 = vmatprep.mubr.msk.f32.mxu0 %vm255_vm0, %v63_v58  ;;  %1617 = vmatprep.mubr.msk.f32.mxu1 %vm255_vm0, %v63_v58  ;;  %v1326_v58 = vld [vmem:[%s2492_s1 + $0x80] sm:$0xff] }
 0x120   :  { %1597 = vmatmul.mubr.msk.f32.gmra.mrb[10].mxu0 %vm255_vm0, %v64_v59  ;;  %1618 = vmatmul.mubr.msk.f32.gmra.mrb[10].mxu1 %vm255_vm0, %v64_v59  ;;  %v1327_v59 = vld [vmem:[%s2492_s1 + $0x88] sm:$0xff] }
 0x1eb   :  { %v1592_v60 = vpop.f32.mrb[6].mxu0  ;;  %v1613_v61 = vpop.f32.mrb[6].mxu1 }
 0x1ec   :  { %v465_v62 = vadd.f32 %v1613_v61, %v1592_v60  ;;  %v340_v63 = vpop.f32.mrb[7].mxu0  ;;  %v435_v0 = vpop.f32.mrb[7].mxu1 }
 0x1ed   :  { %v464_v1 = vadd.f32 %v435_v0, %v340_v63 }
 0x1ef   :  { %v2141_v2 = vpop.f32.mrb[8].mxu1  ;;  %470 = vrot.lane.b32.xlu0 %v464_v1, %s1988_s16  ;;  %v2144_v3 = vpop.f32.mrb[8].mxu0 }
 0x1f0   :  { %v467_v4 = vadd.f32 %v2141_v2, %v2144_v3  ;;  %v350_v5 = vpop.f32.mrb[9].mxu0  ;;  %v445_v6 = vpop.f32.mrb[9].mxu1 }
 0x1f1   :  { %v466_v7 = vadd.f32 %v445_v6, %v350_v5 }
 0x1f3   :  { %v2148_v8 = vpop.f32.mrb[10].mxu1  ;;  %472 = vrot.lane.b32.xlu0 %v465_v62, %s1988_s16  ;;  %474 = vrot.lane.b32.xlu1 %v466_v7, %s1988_s16  ;;  %v2152_v9 = vpop.f32.mrb[10].mxu0 }
 0x1f4   :  { %v469_v10 = vadd.f32 %v2148_v8, %v2152_v9  ;;  %v360_v11 = vpop.f32.mrb[11].mxu0  ;;  %v455_v12 = vpop.f32.mrb[11].mxu1 }
 0x1f5   :  { %v468_v13 = vadd.f32 %v455_v12, %v360_v11 }
 0x1f7   :  { %476 = vrot.lane.b32.xlu1 %v467_v4, %s1988_s16  ;;  %478 = vrot.lane.b32.xlu0 %v468_v13, %s1988_s16 }
 0x1fb   :  { %480 = vrot.lane.b32.xlu1 %v469_v10, %s1988_s16 }
 0x261   :  { %v471_v14 = vpop.permute.xlu0 %470 }
 0x262   :  { %v482_v15 = vadd.f32 %v471_v14, %v464_v1  ;;  %v1832_v1 = vpack.c.bf16 %v1327_v59, %v1326_v58  ;;  %v1329_v14 = vld [vmem:[%s2492_s1 + $0x98] sm:$0xff] }
 0x264   :  { %488 = vrot.lane.b32.xlu0 %v482_v15, %s1989_s17  ;;  %1833 = vmatprep.subr.bf16.mxu0 %v1832_v1 }
 0x265   :  { %v473_v16 = vpop.permute.xlu0 %472  ;;  %v475_v17 = vpop.permute.xlu1 %474  ;;  %1865 = vmatprep.subr.bf16.mxu1 %v1832_v1  ;;  %1835 = vmatpush3.bf16.msra.mxu0 %v1832_v1 }
 0x266   :  { %v483_v18 = vadd.f32 %v473_v16, %v465_v62  ;;  %v484_v19 = vadd.f32 %v475_v17, %v466_v7  ;;  %1867 = vmatpush3.bf16.msra.mxu1 %v1832_v1  ;;  %v1330_v16 = vld [vmem:[%s2492_s1 + $0xa0] sm:$0xff]  ;;  %v1331_v17 = vld [vmem:[%s2492_s1 + $0xa8] sm:$0xff] }
 0x268   :  { %490 = vrot.lane.b32.xlu1 %v483_v18, %s1989_s17  ;;  %492 = vrot.lane.b32.xlu0 %v484_v19, %s1989_s17 }
 0x269   :  { %v477_v20 = vpop.permute.xlu1 %476  ;;  %v479_v21 = vpop.permute.xlu0 %478 }
 0x26a   :  { %v485_v22 = vadd.f32 %v477_v20, %v467_v4  ;;  %v486_v23 = vadd.f32 %v479_v21, %v468_v13  ;;  %v1333_v20 = vld [vmem:[%s2492_s1 + $0xb8] sm:$0xff] }
 0x26c   :  { %494 = vrot.lane.b32.xlu1 %v485_v22, %s1989_s17  ;;  %496 = vrot.lane.b32.xlu0 %v486_v23, %s1989_s17 }
 0x26d   :  { %v481_v24 = vpop.permute.xlu1 %480 }
 0x26e   :  { %v487_v25 = vadd.f32 %v481_v24, %v469_v10 }
 0x270   :  { %498 = vrot.lane.b32.xlu1 %v487_v25, %s1989_s17 }
 0x2d6   :  { %v489_v26 = vpop.permute.xlu0 %488 }
 0x2d7   :  { %v500_v27 = vadd.f32 %v489_v26, %v482_v15  ;;  %v1335_v26 = vld [vmem:[%s2492_s1 + $0xc8] sm:$0xff] }
 0x2d9   :  { %v506_v28 = vmul.f32 0.125, %v500_v27 }
 0x2da   :  { %v491_v29 = vpop.permute.xlu1 %490  ;;  %v493_v30 = vpop.permute.xlu0 %492 }
 0x2db   :  { %v2165_v31 = vsub.f32 %v340_v63, %v506_v28  ;;  %v2167_v32 = vsub.f32 %v435_v0, %v506_v28  ;;  %v501_v33 = vadd.f32 %v491_v29, %v483_v18  ;;  %v502_v34 = vadd.f32 %v493_v30, %v484_v19  ;;  %v1332_v19 = vld [vmem:[%s2492_s1 + $0xb0] sm:$0xff] }
 0x2dc   :  { %v1840_v18 = vpack.c.bf16 %v1331_v17, %v1330_v16  ;;  %v584_v17 = vld [vmem:[#allocation2] sm:$0xff] }
 0x2dd   :  { %v524_v35 = vmul.f32 %v2165_v31, %v2165_v31  ;;  %v530_v36 = vmul.f32 %v2167_v32, %v2167_v32  ;;  %v507_v37 = vmul.f32 0.125, %v501_v33  ;;  %v508_v38 = vmul.f32 0.125, %v502_v34  ;;  %v1336_v33 = vld [vmem:[%s2492_s1 + $0xd0] sm:$0xff]  ;;  %v1337_v34 = vld [vmem:[%s2492_s1 + $0xd8] sm:$0xff] }
 0x2de   :  { %v495_v39 = vpop.permute.xlu1 %494  ;;  %v497_v40 = vpop.permute.xlu0 %496 }
 0x2df   :  { %v2173_v41 = vsub.f32 %v1592_v60, %v507_v37  ;;  %v2175_v42 = vsub.f32 %v1613_v61, %v507_v37  ;;  %v2177_v43 = vsub.f32 %v350_v5, %v508_v38  ;;  %v2179_v44 = vsub.f32 %v445_v6, %v508_v38 }
 0x2e0   :  { %v503_v45 = vadd.f32 %v495_v39, %v485_v22  ;;  %v504_v46 = vadd.f32 %v497_v40, %v486_v23  ;;  %v536_v47 = vadd.f32 %v530_v36, %v524_v35  ;;  %v1844_v22 = vpack.c.bf16 %v1333_v20, %v1332_v19  ;;  %v1338_v40 = vld [vmem:[%s2492_s1 + $0xe0] sm:$0xff]  ;;  %v585_v20 = vld [vmem:[#allocation2 + $0x8] sm:$0xff] }
 0x2e1   :  { %v525_v48 = vmul.f32 %v2173_v41, %v2173_v41  ;;  %v531_v49 = vmul.f32 %v2175_v42, %v2175_v42  ;;  %v526_v50 = vmul.f32 %v2177_v43, %v2177_v43  ;;  %v532_v51 = vmul.f32 %v2179_v44, %v2179_v44 }
 0x2e2   :  { %v509_v52 = vmul.f32 0.125, %v503_v45  ;;  %v510_v53 = vmul.f32 0.125, %v504_v46  ;;  %542 = vrot.lane.b32.xlu0 %v536_v47, %s1988_s16  ;;  %v499_v54 = vpop.permute.xlu1 %498  ;;  %v1852_v37 = vpack.c.bf16 %v1337_v34, %v1336_v33  ;;  %v1339_v45 = vld [vmem:[%s2492_s1 + $0xe8] sm:$0xff]  ;;  %v610_v33 = vld [vmem:[#allocation2 + $0x38] sm:$0xff] }
 0x2e3   :  { %v505_v55 = vadd.f32 %v499_v54, %v487_v25  ;;  %v537_v56 = vadd.f32 %v531_v49, %v525_v48  ;;  %v538_v57 = vadd.f32 %v532_v51, %v526_v50  ;;  %v1334_v25 = vld [vmem:[%s2492_s1 + $0xc0] sm:$0xff]  ;;  %v1340_v48 = vld [vmem:[%s2492_s1 + $0xf0] sm:$0xff]  ;;  %v1341_v49 = vld [vmem:[%s2492_s1 + $0xf8] sm:$0xff] }
 0x2e4   :  { %v2197_v60 = vsub.f32 %v2144_v3, %v509_v52  ;;  %v2200_v61 = vsub.f32 %v2141_v2, %v509_v52  ;;  %v2202_v62 = vsub.f32 %v360_v11, %v510_v53  ;;  %v2204_v63 = vsub.f32 %v455_v12, %v510_v53 }
 0x2e5   :  { %v511_v0 = vmul.f32 0.125, %v505_v55  ;;  %544 = vrot.lane.b32.xlu1 %v537_v56, %s1988_s16  ;;  %v1848_v29 = vpack.c.bf16 %v1335_v26, %v1334_v25  ;;  %v1860_v51 = vpack.c.bf16 %v1341_v49, %v1340_v48 }
 0x2e6   :  { %v527_v4 = vmul.f32 %v2197_v60, %v2197_v60  ;;  %v533_v5 = vmul.f32 %v2200_v61, %v2200_v61  ;;  %v528_v3 = vmul.f32 %v2202_v62, %v2202_v62  ;;  %v534_v2 = vmul.f32 %v2204_v63, %v2204_v63  ;;  %546 = vrot.lane.b32.xlu0 %v538_v57, %s1988_s16 }
 0x2e7   :  { %v2217_v6 = vsub.f32 %v2152_v9, %v511_v0  ;;  %v2220_v7 = vsub.f32 %v2148_v8, %v511_v0  ;;  %v1328_v8 = vld [vmem:[%s2492_s1 + $0x90] sm:$0xff] }
 0x2e8   :  { %v539_v10 = vadd.f32 %v533_v5, %v527_v4  ;;  %v540_v11 = vadd.f32 %v534_v2, %v528_v3  ;;  %v1836_v15 = vpack.c.bf16 %v1329_v14, %v1328_v8 }
 0x2e9   :  { %v529_v12 = vmul.f32 %v2217_v6, %v2217_v6  ;;  %v535_v13 = vmul.f32 %v2220_v7, %v2220_v7 }
 0x2ea   :  { %548 = vrot.lane.b32.xlu1 %v539_v10, %s1988_s16  ;;  %550 = vrot.lane.b32.xlu0 %v540_v11, %s1988_s16 }
 0x2eb   :  { %v541_v9 = vadd.f32 %v535_v13, %v529_v12  ;;  %1837 = vmatprep.subr.bf16.mxu0 %v1836_v15  ;;  %1869 = vmatprep.subr.bf16.mxu1 %v1836_v15 }
 0x2ec   :  { %1839 = vmatpush3.bf16.msra.mxu0 %v1836_v15  ;;  %1871 = vmatpush3.bf16.msra.mxu1 %v1836_v15 }
 0x2ed   :  { %1841 = vmatprep.subr.bf16.mxu0 %v1840_v18  ;;  %1873 = vmatprep.subr.bf16.mxu1 %v1840_v18 }
 0x2ee   :  { %552 = vrot.lane.b32.xlu1 %v541_v9, %s1988_s16 }
 0x2f0   :  { %1843 = vmatpush3.bf16.msra.mxu0 %v1840_v18  ;;  %1875 = vmatpush3.bf16.msra.mxu1 %v1840_v18 }
 0x2f1   :  { %1845 = vmatprep.subr.bf16.mxu0 %v1844_v22  ;;  %1877 = vmatprep.subr.bf16.mxu1 %v1844_v22 }
 0x2f4   :  { %1847 = vmatpush3.bf16.msra.mxu0 %v1844_v22  ;;  %1879 = vmatpush3.bf16.msra.mxu1 %v1844_v22  ;;  %v609_v22 = vld [vmem:[#allocation2 + $0x30] sm:$0xff] }
 0x2f5   :  { %1849 = vmatprep.subr.bf16.mxu0 %v1848_v29  ;;  %1881 = vmatprep.subr.bf16.mxu1 %v1848_v29 }
 0x2f8   :  { %1851 = vmatpush3.bf16.msra.mxu0 %v1848_v29  ;;  %1883 = vmatpush3.bf16.msra.mxu1 %v1848_v29 }
 0x2f9   :  { %1853 = vmatprep.subr.bf16.mxu0 %v1852_v37  ;;  %1885 = vmatprep.subr.bf16.mxu1 %v1852_v37 }
 0x2fc   :  { %1855 = vmatpush3.bf16.msra.mxu0 %v1852_v37  ;;  %1887 = vmatpush3.bf16.msra.mxu1 %v1852_v37  ;;  %v611_v37 = vld [vmem:[#allocation2 + $0x40] sm:$0xff] }
 0x354   :  { %v543_v21 = vpop.permute.xlu0 %542 }
 0x355   :  { %v554_v23 = vadd.f32 %v543_v21, %v536_v47  ;;  %v1856_v47 = vpack.c.bf16 %v1339_v45, %v1338_v40 }
 0x357   :  { %560 = vrot.lane.b32.xlu0 %v554_v23, %s1989_s17  ;;  %v545_v24 = vpop.permute.xlu1 %544  ;;  %1857 = vmatprep.subr.bf16.mxu0 %v1856_v47 }
 0x358   :  { %v555_v27 = vadd.f32 %v545_v24, %v537_v56  ;;  %v547_v28 = vpop.permute.xlu0 %546  ;;  %1889 = vmatprep.subr.bf16.mxu1 %v1856_v47  ;;  %1859 = vmatpush3.bf16.msra.mxu0 %v1856_v47 }
 0x359   :  { %v556_v30 = vadd.f32 %v547_v28, %v538_v57  ;;  %1891 = vmatpush3.bf16.msra.mxu1 %v1856_v47  ;;  %1861 = vmatprep.subr.bf16.mxu0 %v1860_v51 }
 0x35a   :  { %562 = vrot.lane.b32.xlu1 %v555_v27, %s1989_s17  ;;  %1893 = vmatprep.subr.bf16.mxu1 %v1860_v51 }
 0x35b   :  { %564 = vrot.lane.b32.xlu0 %v556_v30, %s1989_s17 }
 0x35c   :  { %v549_v35 = vpop.permute.xlu1 %548  ;;  %v551_v36 = vpop.permute.xlu0 %550  ;;  %1863 = vmatpush3.bf16.msra.mxu0 %v1860_v51 }
 0x35d   :  { %v557_v38 = vadd.f32 %v549_v35, %v539_v10  ;;  %v558_v39 = vadd.f32 %v551_v36, %v540_v11  ;;  %1895 = vmatpush3.bf16.msra.mxu1 %v1860_v51 }
 0x35f   :  { %566 = vrot.lane.b32.xlu1 %v557_v38, %s1989_s17  ;;  %568 = vrot.lane.b32.xlu0 %v558_v39, %s1989_s17 }
 0x360   :  { %v553_v46 = vpop.permute.xlu1 %552 }
 0x361   :  { %v559_v50 = vadd.f32 %v553_v46, %v541_v9  ;;  %v588_v46 = vld [vmem:[#allocation2 + $0x20] sm:$0xff] }
 0x363   :  { %570 = vrot.lane.b32.xlu1 %v559_v50, %s1989_s17 }
 0x3c9   :  { %v561_v52 = vpop.permute.xlu0 %560 }
 0x3ca   :  { %v572_v53 = vadd.f32 %v561_v52, %v554_v23  ;;  %v586_v23 = vld [vmem:[#allocation2 + $0x10] sm:$0xff] }
 0x3cc   :  { %v578_v54 = vmul.f32 0.125, %v572_v53  ;;  %v563_v55 = vpop.permute.xlu1 %562 }
 0x3cd   :  { %v573_v56 = vadd.f32 %v563_v55, %v555_v27  ;;  %v565_v57 = vpop.permute.xlu0 %564 }
 0x3ce   :  { %v590_v58 = vadd.f32 1e-05, %v578_v54  ;;  %v574_v59 = vadd.f32 %v565_v57, %v556_v30  ;;  %v612_v57 = vld [vmem:[#allocation2 + $0x48] sm:$0xff] }
 0x3cf   :  { %v579_v0 = vmul.f32 0.125, %v573_v56 }
 0x3d0   :  { %1925 = vrsqrt.f32 %v590_v58  ;;  %v580_v1 = vmul.f32 0.125, %v574_v59 }
 0x3d1   :  { %v591_v4 = vadd.f32 1e-05, %v579_v0  ;;  %v567_v5 = vpop.permute.xlu1 %566  ;;  %v569_v3 = vpop.permute.xlu0 %568 }
 0x3d2   :  { %v592_v2 = vadd.f32 1e-05, %v580_v1  ;;  %v575_v10 = vadd.f32 %v567_v5, %v557_v38  ;;  %v576_v11 = vadd.f32 %v569_v3, %v558_v39  ;;  %v613_v5 = vld [vmem:[#allocation2 + $0x50] sm:$0xff] }
 0x3d3   :  { %1927 = vrsqrt.f32 %v591_v4 }
 0x3d4   :  { %1929 = vrsqrt.f32 %v592_v2  ;;  %v581_v12 = vmul.f32 0.125, %v575_v10  ;;  %v582_v13 = vmul.f32 0.125, %v576_v11 }
 0x3d5   :  { %v571_v9 = vpop.permute.xlu1 %570 }
 0x3d6   :  { %v593_v8 = vadd.f32 1e-05, %v581_v12  ;;  %v594_v14 = vadd.f32 1e-05, %v582_v13  ;;  %v577_v15 = vadd.f32 %v571_v9, %v559_v50 }
 0x3d8   :  { %1931 = vrsqrt.f32 %v593_v8  ;;  %v583_v16 = vmul.f32 0.125, %v577_v15  ;;  %v614_v15 = vld [vmem:[#allocation2 + $0x58] sm:$0xff] }
 0x3d9   :  { %1933 = vrsqrt.f32 %v594_v14 }
 0x3da   :  { %v1926_v18 = vpop.eup %1925  ;;  %v595_v19 = vadd.f32 1e-05, %v583_v16 }
 0x3db   :  { %v602_v21 = vmul.f32 %v1926_v18, %v584_v17 }
 0x3dc   :  { %1935 = vrsqrt.f32 %v595_v19 }
 0x3dd   :  { %v1928_v24 = vpop.eup %1927  ;;  %v615_v25 = vmul.f32 %v602_v21, %v2165_v31  ;;  %v627_v26 = vmul.f32 %v602_v21, %v2167_v32  ;;  %v587_v31 = vld [vmem:[#allocation2 + $0x18] sm:$0xff] }
 0x3de   :  { %v1930_v27 = vpop.eup %1929  ;;  %v603_v28 = vmul.f32 %v1928_v24, %v585_v20 }
 0x3df   :  { %v621_v29 = vadd.f32 %v615_v25, %v609_v22  ;;  %v633_v30 = vadd.f32 %v627_v26, %v609_v22  ;;  %v604_v34 = vmul.f32 %v1930_v27, %v586_v23 }
 0x3e0   :  { %v616_v35 = vmul.f32 %v603_v28, %v2173_v41  ;;  %v628_v36 = vmul.f32 %v603_v28, %v2175_v42 }
 0x3e1   :  { %v639_v38 = vmul.f32 0.1, %v621_v29  ;;  %v651_v39 = vmul.f32 0.1, %v633_v30  ;;  %v617_v40 = vmul.f32 %v604_v34, %v2177_v43  ;;  %v629_v45 = vmul.f32 %v604_v34, %v2179_v44  ;;  %v589_v44 = vld [vmem:[#allocation2 + $0x28] sm:$0xff] }
 0x3e2   :  { %v1932_v32 = vpop.eup %1931  ;;  %v622_v47 = vadd.f32 %v616_v35, %v610_v33  ;;  %v634_v48 = vadd.f32 %v628_v36, %v610_v33 }
 0x3e3   :  { %v1934_v49 = vpop.eup %1933  ;;  %v645_v50 = vmax.f32 %v621_v29, %v639_v38  ;;  %v657_v51 = vmax.f32 %v633_v30, %v651_v39  ;;  %v623_v52 = vadd.f32 %v617_v40, %v611_v37  ;;  %v635_v53 = vadd.f32 %v629_v45, %v611_v37 }
 0x3e4   :  { %v640_v41 = vmul.f32 0.1, %v622_v47  ;;  %v652_v54 = vmul.f32 0.1, %v634_v48  ;;  %v605_v42 = vmul.f32 %v1932_v32, %v587_v31  ;;  %v606_v55 = vmul.f32 %v1934_v49, %v588_v46  ;;  %v1343_v49 = vld [vmem:[%s2493_s2 + $0x38] sm:$0xff] }
 0x3e5   :  { %1652 = vmatprep.mubr.f32.mxu0 %v645_v50  ;;  %1693 = vmatprep.mubr.f32.mxu1 %v657_v51  ;;  %v641_v56 = vmul.f32 0.1, %v623_v52  ;;  %v653_v43 = vmul.f32 0.1, %v635_v53  ;;  %v1344_v50 = vld [vmem:[%s2493_s2 + $0x40] sm:$0xff]  ;;  %v1345_v51 = vld [vmem:[%s2493_s2 + $0x48] sm:$0xff] }
 0x3e6   :  { %v1936_v58 = vpop.eup %1935  ;;  %v646_v59 = vmax.f32 %v622_v47, %v640_v41  ;;  %v658_v0 = vmax.f32 %v634_v48, %v652_v54  ;;  %v618_v1 = vmul.f32 %v605_v42, %v2197_v60  ;;  %v630_v4 = vmul.f32 %v605_v42, %v2200_v61 }
 0x3e7   :  { %v647_v3 = vmax.f32 %v623_v52, %v641_v56  ;;  %v659_v2 = vmax.f32 %v635_v53, %v653_v43  ;;  %v619_v10 = vmul.f32 %v606_v55, %v2202_v62  ;;  %v631_v11 = vmul.f32 %v606_v55, %v2204_v63  ;;  %v1346_v52 = vld [vmem:[%s2493_s2 + $0x50] sm:$0xff]  ;;  %v1347_v53 = vld [vmem:[%s2493_s2 + $0x58] sm:$0xff] }
 0x3e8   :  { %1653 = vmatmul.mubr.f32.vlgmr.msra.gmra.mrb[12].mxu0 %v646_v59  ;;  %1694 = vmatmul.mubr.f32.vlgmr.msra.gmra.mrb[12].mxu1 %v658_v0  ;;  %v624_v12 = vadd.f32 %v618_v1, %v612_v57  ;;  %v636_v13 = vadd.f32 %v630_v4, %v612_v57  ;;  %v607_v9 = vmul.f32 %v1936_v58, %v589_v44 }
 0x3e9   :  { %1655 = vmatprep.mubr.f32.mxu0 %v647_v3  ;;  %1696 = vmatprep.mubr.f32.mxu1 %v659_v2  ;;  %v625_v8 = vadd.f32 %v619_v10, %v613_v5  ;;  %v637_v14 = vadd.f32 %v631_v11, %v613_v5 }
 0x3ea   :  { %v642_v60 = vmul.f32 0.1, %v624_v12  ;;  %v654_v16 = vmul.f32 0.1, %v636_v13  ;;  %v620_v61 = vmul.f32 %v607_v9, %v2217_v6  ;;  %v632_v17 = vmul.f32 %v607_v9, %v2220_v7  ;;  %v1342_v6 = vld [vmem:[%s2493_s2 + $0x30] sm:$0xff] }
 0x3eb   :  { %v643_v18 = vmul.f32 0.1, %v625_v8  ;;  %v655_v62 = vmul.f32 0.1, %v637_v14 }
 0x3ec   :  { %v648_v19 = vmax.f32 %v624_v12, %v642_v60  ;;  %v660_v63 = vmax.f32 %v636_v13, %v654_v16  ;;  %v626_v20 = vadd.f32 %v620_v61, %v614_v15  ;;  %v638_v21 = vadd.f32 %v632_v17, %v614_v15 }
 0x3ed   :  { %v649_v22 = vmax.f32 %v625_v8, %v643_v18  ;;  %v661_v23 = vmax.f32 %v637_v14, %v655_v62 }
 0x3ee   :  { %1656 = vmatmul.mubr.f32.gmra.mrb[14].mxu0 %v648_v19  ;;  %1697 = vmatmul.mubr.f32.gmra.mrb[14].mxu1 %v660_v63  ;;  %v644_v24 = vmul.f32 0.1, %v626_v20  ;;  %v656_v25 = vmul.f32 0.1, %v638_v21 }
 0x3ef   :  { %1658 = vmatprep.mubr.f32.mxu0 %v649_v22  ;;  %1699 = vmatprep.mubr.f32.mxu1 %v661_v23 }
 0x3f0   :  { %v650_v26 = vmax.f32 %v626_v20, %v644_v24  ;;  %v662_v27 = vmax.f32 %v638_v21, %v656_v25 }
 0x3f2   :  { %1659 = vmatmul.mubr.f32.gmra.mrb[16].mxu0 %v650_v26  ;;  %1700 = vmatmul.mubr.f32.gmra.mrb[16].mxu1 %v662_v27 }
 0x3f3   :  { %1714 = vmatprep.mubr.msk.f32.mxu0 %vm255_vm0, %v1342_v6  ;;  %1735 = vmatprep.mubr.msk.f32.mxu1 %vm255_vm0, %v1342_v6 }
 0x4bb   :  { %v1654_v7 = vpop.f32.mrb[12].mxu0  ;;  %v1695_v28 = vpop.f32.mrb[12].mxu1 }
 0x4bc   :  { %v753_v29 = vpop.f32.mrb[13].mxu0  ;;  %v848_v30 = vpop.f32.mrb[13].mxu1 }
 0x4bd   :  { %v1896_v33 = vpack.c.bf16 %v1654_v7, %v753_v29  ;;  %v1908_v34 = vpack.c.bf16 %v1695_v28, %v848_v30 }
 0x4bf   :  { %1897 = vmatprep.subr.bf16.mxu0 %v1896_v33  ;;  %1909 = vmatprep.subr.bf16.mxu1 %v1908_v34 }
 0x4c0   :  { %1899 = vmatpush3.bf16.msra.mxu0 %v1896_v33  ;;  %1911 = vmatpush3.bf16.msra.mxu1 %v1908_v34 }
 0x4c1   :  { %v1657_v35 = vpop.f32.mrb[14].mxu0  ;;  %v1698_v36 = vpop.f32.mrb[14].mxu1 }
 0x4c2   :  { %v763_v37 = vpop.f32.mrb[15].mxu0  ;;  %v858_v38 = vpop.f32.mrb[15].mxu1 }
 0x4c3   :  { %v1900_v39 = vpack.c.bf16 %v1657_v35, %v763_v37  ;;  %v1912_v40 = vpack.c.bf16 %v1698_v36, %v858_v38 }
 0x4c5   :  { %v1660_v45 = vpop.f32.mrb[16].mxu0  ;;  %v1701_v31 = vpop.f32.mrb[16].mxu1  ;;  %1901 = vmatprep.subr.bf16.mxu0 %v1900_v39  ;;  %1913 = vmatprep.subr.bf16.mxu1 %v1912_v40 }
 0x4c6   :  { %v773_v46 = vpop.f32.mrb[17].mxu0  ;;  %v868_v32 = vpop.f32.mrb[17].mxu1  ;;  %1903 = vmatpush3.bf16.msra.mxu0 %v1900_v39  ;;  %1915 = vmatpush3.bf16.msra.mxu1 %v1912_v40 }
 0x4c7   :  { %v1904_v47 = vpack.c.bf16 %v1660_v45, %v773_v46  ;;  %v1916_v48 = vpack.c.bf16 %v1701_v31, %v868_v32 }
 0x4c9   :  { %1905 = vmatprep.subr.bf16.mxu0 %v1904_v47  ;;  %1917 = vmatprep.subr.bf16.mxu1 %v1916_v48 }
 0x4ca   :  { %1907 = vmatpush3.bf16.msra.mxu0 %v1904_v47  ;;  %1919 = vmatpush3.bf16.msra.mxu1 %v1916_v48 }
 0x4cd   :  { %1715 = vmatmul.mubr.msk.f32.vlgmr.msra.gmra.mrb[18].mxu0 %vm255_vm0, %v1343_v49  ;;  %1736 = vmatmul.mubr.msk.f32.vlgmr.msra.gmra.mrb[18].mxu1 %vm255_vm0, %v1343_v49 }
 0x4ce   :  { %1717 = vmatprep.mubr.msk.f32.mxu0 %vm255_vm0, %v1344_v50  ;;  %1738 = vmatprep.mubr.msk.f32.mxu1 %vm255_vm0, %v1344_v50 }
 0x4d1   :  { %1718 = vmatmul.mubr.msk.f32.gmra.mrb[20].mxu0 %vm255_vm0, %v1345_v51  ;;  %1739 = vmatmul.mubr.msk.f32.gmra.mrb[20].mxu1 %vm255_vm0, %v1345_v51 }
 0x4d2   :  { %1720 = vmatprep.mubr.msk.f32.mxu0 %vm255_vm0, %v1346_v52  ;;  %1741 = vmatprep.mubr.msk.f32.mxu1 %vm255_vm0, %v1346_v52 }
 0x4d5   :  { %1721 = vmatmul.mubr.msk.f32.gmra.mrb[22].mxu0 %vm255_vm0, %v1347_v53  ;;  %1742 = vmatmul.mubr.msk.f32.gmra.mrb[22].mxu1 %vm255_vm0, %v1347_v53 }
 0x5a0   :  { %v1716_v41 = vpop.f32.mrb[18].mxu0  ;;  %v1737_v54 = vpop.f32.mrb[18].mxu1 }
 0x5a1   :  { %v1086_v42 = vadd.f32 %v1737_v54, %v1716_v41  ;;  %v961_v55 = vpop.f32.mrb[19].mxu0  ;;  %v1056_v56 = vpop.f32.mrb[19].mxu1 }
 0x5a2   :  { %v1085_v43 = vadd.f32 %v1056_v56, %v961_v55 }
 0x5a3   :  { %1093 = vrot.lane.b32.xlu1 %v1086_v42, %s1988_s16 }
 0x5a4   :  { %v1740_v57 = vpop.f32.mrb[20].mxu1  ;;  %1091 = vrot.lane.b32.xlu0 %v1085_v43, %s1988_s16  ;;  %v1719_v44 = vpop.f32.mrb[20].mxu0 }
 0x5a5   :  { %v1088_v58 = vadd.f32 %v1740_v57, %v1719_v44  ;;  %v971_v59 = vpop.f32.mrb[21].mxu0  ;;  %v1066_v0 = vpop.f32.mrb[21].mxu1 }
 0x5a6   :  { %v1087_v1 = vadd.f32 %v1066_v0, %v971_v59 }
 0x5a7   :  { %1097 = vrot.lane.b32.xlu1 %v1088_v58, %s1988_s16 }
 0x5a8   :  { %v2322_v4 = vpop.f32.mrb[22].mxu1  ;;  %1095 = vrot.lane.b32.xlu0 %v1087_v1, %s1988_s16  ;;  %v2325_v5 = vpop.f32.mrb[22].mxu0 }
 0x5a9   :  { %v1090_v3 = vadd.f32 %v2322_v4, %v2325_v5  ;;  %v2329_v2 = vpop.f32.mrb[23].mxu0  ;;  %v2331_v10 = vpop.f32.mrb[23].mxu1 }
 0x5aa   :  { %v1089_v11 = vadd.f32 %v2331_v10, %v2329_v2 }
 0x5ab   :  { %1101 = vrot.lane.b32.xlu1 %v1090_v3, %s1988_s16 }
 0x5ac   :  { %1099 = vrot.lane.b32.xlu0 %v1089_v11, %s1988_s16 }
 0x615   :  { %v1094_v12 = vpop.permute.xlu1 %1093 }
 0x616   :  { %v1104_v13 = vadd.f32 %v1094_v12, %v1086_v42  ;;  %v1092_v9 = vpop.permute.xlu0 %1091 }
 0x617   :  { %v1103_v8 = vadd.f32 %v1092_v9, %v1085_v43 }
 0x618   :  { %1111 = vrot.lane.b32.xlu1 %v1104_v13, %s1989_s17 }
 0x619   :  { %v1098_v14 = vpop.permute.xlu1 %1097  ;;  %1109 = vrot.lane.b32.xlu0 %v1103_v8, %s1989_s17 }
 0x61a   :  { %v1106_v15 = vadd.f32 %v1098_v14, %v1088_v58  ;;  %v1096_v60 = vpop.permute.xlu0 %1095 }
 0x61b   :  { %v1105_v16 = vadd.f32 %v1096_v60, %v1087_v1 }
 0x61c   :  { %1115 = vrot.lane.b32.xlu1 %v1106_v15, %s1989_s17 }
 0x61d   :  { %v1102_v61 = vpop.permute.xlu1 %1101  ;;  %1113 = vrot.lane.b32.xlu0 %v1105_v16, %s1989_s17 }
 0x61e   :  { %v1108_v17 = vadd.f32 %v1102_v61, %v1090_v3  ;;  %v1100_v18 = vpop.permute.xlu0 %1099 }
 0x61f   :  { %v1107_v62 = vadd.f32 %v1100_v18, %v1089_v11 }
 0x620   :  { %1119 = vrot.lane.b32.xlu1 %v1108_v17, %s1989_s17 }
 0x621   :  { %1117 = vrot.lane.b32.xlu0 %v1107_v62, %s1989_s17 }
 0x68a   :  { %v1112_v19 = vpop.permute.xlu1 %1111 }
 0x68b   :  { %v1122_v63 = vadd.f32 %v1112_v19, %v1104_v13  ;;  %v1110_v20 = vpop.permute.xlu0 %1109 }
 0x68c   :  { %v1121_v21 = vadd.f32 %v1110_v20, %v1103_v8 }
 0x68d   :  { %v1128_v22 = vmul.f32 0.125, %v1122_v63 }
 0x68e   :  { %v1127_v23 = vmul.f32 0.125, %v1121_v21  ;;  %v1116_v24 = vpop.permute.xlu1 %1115 }
 0x68f   :  { %v2343_v25 = vsub.f32 %v1716_v41, %v1128_v22  ;;  %v2345_v26 = vsub.f32 %v1737_v54, %v1128_v22  ;;  %v1124_v27 = vadd.f32 %v1116_v24, %v1106_v15  ;;  %v1114_v6 = vpop.permute.xlu0 %1113 }
 0x690   :  { %v2347_v7 = vsub.f32 %v961_v55, %v1127_v23  ;;  %v2349_v28 = vsub.f32 %v1056_v56, %v1127_v23  ;;  %v1123_v29 = vadd.f32 %v1114_v6, %v1105_v16 }
 0x691   :  { %v1146_v30 = vmul.f32 %v2343_v25, %v2343_v25  ;;  %v1152_v33 = vmul.f32 %v2345_v26, %v2345_v26  ;;  %v1130_v34 = vmul.f32 0.125, %v1124_v27 }
 0x692   :  { %v1145_v35 = vmul.f32 %v2347_v7, %v2347_v7  ;;  %v1151_v36 = vmul.f32 %v2349_v28, %v2349_v28  ;;  %v1129_v37 = vmul.f32 0.125, %v1123_v29  ;;  %v1120_v38 = vpop.permute.xlu1 %1119 }
 0x693   :  { %v2359_v39 = vsub.f32 %v1719_v44, %v1130_v34  ;;  %v2361_v40 = vsub.f32 %v1740_v57, %v1130_v34  ;;  %v1126_v45 = vadd.f32 %v1120_v38, %v1108_v17  ;;  %v1118_v31 = vpop.permute.xlu0 %1117  ;;  %v1158_v46 = vadd.f32 %v1152_v33, %v1146_v30 }
 0x694   :  { %v2363_v32 = vsub.f32 %v971_v59, %v1129_v37  ;;  %v2365_v47 = vsub.f32 %v1066_v0, %v1129_v37  ;;  %v1125_v48 = vadd.f32 %v1118_v31, %v1107_v62  ;;  %v1157_v49 = vadd.f32 %v1151_v36, %v1145_v35 }
 0x695   :  { %v1148_v50 = vmul.f32 %v2359_v39, %v2359_v39  ;;  %v1154_v51 = vmul.f32 %v2361_v40, %v2361_v40  ;;  %v1132_v52 = vmul.f32 0.125, %v1126_v45  ;;  %1165 = vrot.lane.b32.xlu1 %v1158_v46, %s1988_s16 }
 0x696   :  { %v1147_v53 = vmul.f32 %v2363_v32, %v2363_v32  ;;  %v1153_v41 = vmul.f32 %v2365_v47, %v2365_v47  ;;  %v1131_v54 = vmul.f32 0.125, %v1125_v48  ;;  %1163 = vrot.lane.b32.xlu0 %v1157_v49, %s1988_s16  ;;  %v1207_v48 = vld [vmem:[#allocation2 + $0x68] sm:$0xff] }
 0x697   :  { %v2378_v42 = vsub.f32 %v2325_v5, %v1132_v52  ;;  %v2381_v55 = vsub.f32 %v2322_v4, %v1132_v52  ;;  %v1160_v56 = vadd.f32 %v1154_v51, %v1148_v50 }
 0x698   :  { %v2384_v43 = vsub.f32 %v2329_v2, %v1131_v54  ;;  %v2387_v57 = vsub.f32 %v2331_v10, %v1131_v54  ;;  %v1159_v44 = vadd.f32 %v1153_v41, %v1147_v53  ;;  %v1232_v53 = vld [vmem:[#allocation2 + $0x98] sm:$0xff] }
 0x699   :  { %v1150_v58 = vmul.f32 %v2378_v42, %v2378_v42  ;;  %v1156_v59 = vmul.f32 %v2381_v55, %v2381_v55  ;;  %1169 = vrot.lane.b32.xlu1 %v1160_v56, %s1988_s16  ;;  %v1209_v54 = vld [vmem:[#allocation2 + $0x78] sm:$0xff] }
 0x69a   :  { %v1149_v0 = vmul.f32 %v2384_v43, %v2384_v43  ;;  %v1155_v1 = vmul.f32 %v2387_v57, %v2387_v57  ;;  %1167 = vrot.lane.b32.xlu0 %v1159_v44, %s1988_s16 }
 0x69b   :  { %v1162_v4 = vadd.f32 %v1156_v59, %v1150_v58  ;;  %v1231_v58 = vld [vmem:[#allocation2 + $0x90] sm:$0xff] }
 0x69c   :  { %v1161_v5 = vadd.f32 %v1155_v1, %v1149_v0  ;;  %v1208_v59 = vld [vmem:[#allocation2 + $0x70] sm:$0xff] }
 0x69d   :  { %1173 = vrot.lane.b32.xlu1 %v1162_v4, %s1988_s16 }
 0x69e   :  { %1171 = vrot.lane.b32.xlu0 %v1161_v5, %s1988_s16 }
 0x707   :  { %v1166_v3 = vpop.permute.xlu1 %1165 }
 0x708   :  { %v1176_v2 = vadd.f32 %v1166_v3, %v1158_v46  ;;  %v1164_v10 = vpop.permute.xlu0 %1163 }
 0x709   :  { %v1175_v11 = vadd.f32 %v1164_v10, %v1157_v49  ;;  %v1206_v49 = vld [vmem:[#allocation2 + $0x60] sm:$0xff] }
 0x70a   :  { %1183 = vrot.lane.b32.xlu1 %v1176_v2, %s1989_s17 }
 0x70b   :  { %v1170_v12 = vpop.permute.xlu1 %1169  ;;  %1181 = vrot.lane.b32.xlu0 %v1175_v11, %s1989_s17 }
 0x70c   :  { %v1178_v13 = vadd.f32 %v1170_v12, %v1160_v56  ;;  %v1168_v9 = vpop.permute.xlu0 %1167 }
 0x70d   :  { %v1177_v8 = vadd.f32 %v1168_v9, %v1159_v44 }
 0x70e   :  { %1187 = vrot.lane.b32.xlu1 %v1178_v13, %s1989_s17 }
 0x70f   :  { %v1174_v14 = vpop.permute.xlu1 %1173  ;;  %1185 = vrot.lane.b32.xlu0 %v1177_v8, %s1989_s17 }
 0x710   :  { %v1180_v15 = vadd.f32 %v1174_v14, %v1162_v4  ;;  %v1172_v60 = vpop.permute.xlu0 %1171 }
 0x711   :  { %v1179_v16 = vadd.f32 %v1172_v60, %v1161_v5 }
 0x712   :  { %1191 = vrot.lane.b32.xlu1 %v1180_v15, %s1989_s17 }
 0x713   :  { %1189 = vrot.lane.b32.xlu0 %v1179_v16, %s1989_s17 }
 0x77c   :  { %v1184_v61 = vpop.permute.xlu1 %1183 }
 0x77d   :  { %v1194_v17 = vadd.f32 %v1184_v61, %v1176_v2  ;;  %v1182_v18 = vpop.permute.xlu0 %1181 }
 0x77e   :  { %v1193_v62 = vadd.f32 %v1182_v18, %v1175_v11 }
 0x77f   :  { %v1200_v19 = vmul.f32 0.125, %v1194_v17 }
 0x780   :  { %v1199_v63 = vmul.f32 0.125, %v1193_v62  ;;  %v1188_v20 = vpop.permute.xlu1 %1187 }
 0x781   :  { %v1213_v21 = vadd.f32 1e-05, %v1200_v19  ;;  %v1196_v22 = vadd.f32 %v1188_v20, %v1178_v13  ;;  %v1186_v23 = vpop.permute.xlu0 %1185  ;;  %v1234_v13 = vld [vmem:[#allocation2 + $0xa8] sm:$0xff] }
 0x782   :  { %v1212_v24 = vadd.f32 1e-05, %v1199_v63  ;;  %v1195_v27 = vadd.f32 %v1186_v23, %v1177_v8 }
 0x783   :  { %1937 = vrsqrt.f32 %v1213_v21  ;;  %v1202_v6 = vmul.f32 0.125, %v1196_v22 }
 0x784   :  { %1939 = vrsqrt.f32 %v1212_v24  ;;  %v1201_v29 = vmul.f32 0.125, %v1195_v27  ;;  %v1192_v30 = vpop.permute.xlu1 %1191  ;;  %v1210_v24 = vld [vmem:[#allocation2 + $0x80] sm:$0xff] }
 0x785   :  { %v1215_v33 = vadd.f32 1e-05, %v1202_v6  ;;  %v1198_v34 = vadd.f32 %v1192_v30, %v1180_v15  ;;  %v1190_v35 = vpop.permute.xlu0 %1189  ;;  %v1233_v15 = vld [vmem:[#allocation2 + $0xa0] sm:$0xff] }
 0x786   :  { %v1214_v36 = vadd.f32 1e-05, %v1201_v29  ;;  %v1197_v37 = vadd.f32 %v1190_v35, %v1179_v16  ;;  %v1951_v30 = vld [vmem:[%s2491_s0] sm:$0xff] }
 0x787   :  { %1941 = vrsqrt.f32 %v1215_v33  ;;  %v1204_v38 = vmul.f32 0.125, %v1198_v34  ;;  %v1952_v34 = vld [vmem:[%s2491_s0 + $0x8] sm:$0xff] }
 0x788   :  { %1943 = vrsqrt.f32 %v1214_v36  ;;  %v1203_v45 = vmul.f32 0.125, %v1197_v37 }
 0x789   :  { %v1217_v31 = vadd.f32 1e-05, %v1204_v38 }
 0x78a   :  { %v1216_v46 = vadd.f32 1e-05, %v1203_v45 }
 0x78b   :  { %1945 = vrsqrt.f32 %v1217_v31 }
 0x78c   :  { %1947 = vrsqrt.f32 %v1216_v46 }
 0x78d   :  { %v1938_v50 = vpop.eup %1937 }
 0x78e   :  { %v1940_v51 = vpop.eup %1939  ;;  %v1225_v52 = vmul.f32 %v1938_v50, %v1207_v48  ;;  %v1236_v50 = vld [vmem:[#allocation2 + $0xb8] sm:$0xff] }
 0x78f   :  { %v1224_v41 = vmul.f32 %v1940_v51, %v1206_v49 }
 0x790   :  { %v1238_v56 = vmul.f32 %v1225_v52, %v2343_v25  ;;  %v1250_v44 = vmul.f32 %v1225_v52, %v2345_v26 }
 0x791   :  { %v1942_v0 = vpop.eup %1941  ;;  %v1237_v1 = vmul.f32 %v1224_v41, %v2347_v7  ;;  %v1249_v4 = vmul.f32 %v1224_v41, %v2349_v28 }
 0x792   :  { %v1944_v5 = vpop.eup %1943  ;;  %v1244_v3 = vadd.f32 %v1238_v56, %v1232_v53  ;;  %v1256_v2 = vadd.f32 %v1250_v44, %v1232_v53  ;;  %v1227_v10 = vmul.f32 %v1942_v0, %v1209_v54  ;;  %v1235_v44 = vld [vmem:[#allocation2 + $0xb0] sm:$0xff] }
 0x793   :  { %v1243_v11 = vadd.f32 %v1237_v1, %v1231_v58  ;;  %v1255_v12 = vadd.f32 %v1249_v4, %v1231_v58  ;;  %v1226_v9 = vmul.f32 %v1944_v5, %v1208_v59 }
 0x794   :  { %v1262_v8 = vmul.f32 0.1, %v1244_v3  ;;  %v1274_v14 = vmul.f32 0.1, %v1256_v2  ;;  %v1240_v25 = vmul.f32 %v1227_v10, %v2359_v39  ;;  %v1252_v26 = vmul.f32 %v1227_v10, %v2361_v40  ;;  %v1211_v39 = vld [vmem:[#allocation2 + $0x88] sm:$0xff]  ;;  %v1949_v40 = vld [vmem:[%s2491_s0 + $0x10] sm:$0xff] }
 0x795   :  { %v1261_v60 = vmul.f32 0.1, %v1243_v11  ;;  %v1273_v16 = vmul.f32 0.1, %v1255_v12  ;;  %v1239_v7 = vmul.f32 %v1226_v9, %v2363_v32  ;;  %v1251_v28 = vmul.f32 %v1226_v9, %v2365_v47  ;;  %v1946_v61 = vpop.eup %1945  ;;  %v1950_v32 = vld [vmem:[%s2491_s0 + $0x18] sm:$0xff] }
 0x796   :  { %v1268_v17 = vmax.f32 %v1244_v3, %v1262_v8  ;;  %v1280_v18 = vmax.f32 %v1256_v2, %v1274_v14  ;;  %v1246_v62 = vadd.f32 %v1240_v25, %v1234_v13  ;;  %v1258_v19 = vadd.f32 %v1252_v26, %v1234_v13  ;;  %v1948_v63 = vpop.eup %1947 }
 0x797   :  { %v1267_v20 = vmax.f32 %v1243_v11, %v1261_v60  ;;  %v1279_v21 = vmax.f32 %v1255_v12, %v1273_v16  ;;  %v1245_v22 = vadd.f32 %v1239_v7, %v1233_v15  ;;  %v1257_v23 = vadd.f32 %v1251_v28, %v1233_v15 }
 0x798   :  { %v1286_v27 = vadd.f32 %v1949_v40, %v1268_v17  ;;  %v1298_v47 = vadd.f32 %v1950_v32, %v1280_v18  ;;  %v1264_v6 = vmul.f32 0.1, %v1246_v62  ;;  %v1276_v29 = vmul.f32 0.1, %v1258_v19 }
 0x799   :  { %v1285_v33 = vadd.f32 %v1951_v30, %v1267_v20  ;;  %v1297_v35 = vadd.f32 %v1952_v34, %v1279_v21  ;;  %v1263_v36 = vmul.f32 0.1, %v1245_v22  ;;  %v1275_v37 = vmul.f32 0.1, %v1257_v23 }
 0x79a   :  { %1292 = vst [vmem:[%s2495_s4 + $0x10] sm:$0xff] %v1286_v27  ;;  %1304 = vst [vmem:[%s2495_s4 + $0x18] sm:$0xff] %v1298_v47  ;;  %v1270_v38 = vmax.f32 %v1246_v62, %v1264_v6  ;;  %v1282_v45 = vmax.f32 %v1258_v19, %v1276_v29  ;;  %v1229_v31 = vmul.f32 %v1946_v61, %v1211_v39 }
 0x79b   :  { %v1228_v46 = vmul.f32 %v1948_v63, %v1210_v24  ;;  %1291 = vst [vmem:[%s2495_s4] sm:$0xff] %v1285_v33  ;;  %1303 = vst [vmem:[%s2495_s4 + $0x8] sm:$0xff] %v1297_v35  ;;  %v1269_v48 = vmax.f32 %v1245_v22, %v1263_v36  ;;  %v1281_v49 = vmax.f32 %v1257_v23, %v1275_v37 }
 0x79c   :  { %v1242_v54 = vmul.f32 %v1229_v31, %v2378_v42  ;;  %v1254_v56 = vmul.f32 %v1229_v31, %v2381_v55 }
 0x79d   :  { %v1241_v4 = vmul.f32 %v1228_v46, %v2384_v43  ;;  %v1253_v5 = vmul.f32 %v1228_v46, %v2387_v57 }
 0x79e   :  { %v1248_v42 = vadd.f32 %v1242_v54, %v1236_v50  ;;  %v1260_v55 = vadd.f32 %v1254_v56, %v1236_v50 }
 0x79f   :  { %v1247_v43 = vadd.f32 %v1241_v4, %v1235_v44  ;;  %v1259_v57 = vadd.f32 %v1253_v5, %v1235_v44 }
 0x7a0   :  { %v1266_v3 = vmul.f32 0.1, %v1248_v42  ;;  %v1278_v2 = vmul.f32 0.1, %v1260_v55 }
 0x7a1   :  { %v1265_v10 = vmul.f32 0.1, %v1247_v43  ;;  %v1277_v11 = vmul.f32 0.1, %v1259_v57 }
 0x7a2   :  { %v1953_v51 = vld [vmem:[%s2491_s0 + $0x30] sm:$0xff]  ;;  %v1954_v53 = vld [vmem:[%s2491_s0 + $0x38] sm:$0xff]  ;;  %v1955_v58 = vld [vmem:[%s2491_s0 + $0x20] sm:$0xff]  ;;  %v1272_v12 = vmax.f32 %v1248_v42, %v1266_v3  ;;  %v1284_v13 = vmax.f32 %v1260_v55, %v1278_v2 }
 0x7a3   :  { %v1288_v52 = vadd.f32 %v1953_v51, %v1270_v38  ;;  %v1300_v41 = vadd.f32 %v1954_v53, %v1282_v45  ;;  %v1287_v59 = vadd.f32 %v1955_v58, %v1269_v48  ;;  %v1956_v0 = vld [vmem:[%s2491_s0 + $0x28] sm:$0xff]  ;;  %v1271_v9 = vmax.f32 %v1247_v43, %v1265_v10 }
 0x7a4   :  { %v1299_v1 = vadd.f32 %v1956_v0, %v1281_v49  ;;  %v1283_v8 = vmax.f32 %v1259_v57, %v1277_v11 }
 0x7a5   :  { %1294 = vst [vmem:[%s2495_s4 + $0x30] sm:$0xff] %v1288_v52  ;;  %1306 = vst [vmem:[%s2495_s4 + $0x38] sm:$0xff] %v1300_v41 }
 0x7a6   :  { %1293 = vst [vmem:[%s2495_s4 + $0x20] sm:$0xff] %v1287_v59  ;;  %1305 = vst [vmem:[%s2495_s4 + $0x28] sm:$0xff] %v1299_v1 }
 0x7ad   :  { %v1957_v14 = vld [vmem:[%s2491_s0 + $0x50] sm:$0xff]  ;;  %v1958_v26 = vld [vmem:[%s2491_s0 + $0x58] sm:$0xff]  ;;  %v1959_v60 = vld [vmem:[%s2491_s0 + $0x40] sm:$0xff] }
 0x7ae   :  { %v1290_v25 = vadd.f32 %v1957_v14, %v1272_v12  ;;  %v1302_v15 = vadd.f32 %v1958_v26, %v1284_v13  ;;  %v1289_v16 = vadd.f32 %v1959_v60, %v1271_v9  ;;  %v1960_v7 = vld [vmem:[%s2491_s0 + $0x48] sm:$0xff] }
 0x7af   :  { %v1301_v28 = vadd.f32 %v1960_v7, %v1283_v8 }
 0x7b0   :  { %1296 = vst [vmem:[%s2495_s4 + $0x50] sm:$0xff] %v1290_v25  ;;  %1308 = vst [vmem:[%s2495_s4 + $0x58] sm:$0xff] %v1302_v15 }
 0x7b1   :  { %1295 = vst [vmem:[%s2495_s4 + $0x40] sm:$0xff] %v1289_v16  ;;  %1307 = vst [vmem:[%s2495_s4 + $0x48] sm:$0xff] %v1301_v28 }
 0x7b2   :  { %1313 = vsyncpa [#allocation3], 1 }

</bundles_post_ra>
